<compile_context>
chip_gen: v7x
topology: tpu7x:2x2x1
jax: 0.10.0
libtpu: 0.0.40
codegen_flags: <defaults>
</compile_context>

<pallas_src>
import math

import jax
import jax.numpy as jnp
from jax.experimental import pallas as pl
from jax.experimental.pallas import tpu as pltpu


def _build_pe_table(max_seq_len: int, d_model: int, dtype=jnp.float32) -> jnp.ndarray:
    """Deterministic sinusoidal table, shape (max_seq_len, d_model). Plain-JAX init glue."""
    assert d_model % 2 == 0, "d_model must be even (as in the PyTorch module)"
    position = jnp.arange(0, max_seq_len, dtype=jnp.float32)[:, None]            # (L, 1)
    div_term = jnp.exp(
        jnp.arange(0, d_model, 2, dtype=jnp.float32) * (-math.log(10000.0) / d_model)
    )                                                                             # (D/2,)
    angles = position * div_term                                                  # (L, D/2)
    pe = jnp.zeros((max_seq_len, d_model), dtype=jnp.float32)
    pe = pe.at[:, 0::2].set(jnp.sin(angles))
    pe = pe.at[:, 1::2].set(jnp.cos(angles))
    return pe.astype(dtype)


def _pe_add_kernel(x_ref, pe_ref, o_ref):
    # x_ref : (TB, TR, L) input block (may span several batch elements).
    # pe_ref: (TB, 1, L)  per-batch positional rows (f32), broadcast over TR.
    # o_ref : (TB, TR, L) output block.
    o_ref[...] = (x_ref[...].astype(jnp.float32) + pe_ref[...]).astype(o_ref.dtype)


def _largest_divisor_leq(n: int, cap: int) -> int:
    """Largest divisor of n that is <= cap (>= 1)."""
    cap = max(1, min(n, cap))
    for t in range(cap, 0, -1):
        if n % t == 0:
            return t
    return 1


def _pick_row_tile(total_rows: int, rows_target: int) -> int:
    """Row tile <= rows_target, multiple of 8, preferring divisors of total_rows."""
    if rows_target >= total_rows:
        return total_rows
    cap = min(max(8, (rows_target // 8) * 8), total_rows)
    t = (cap // 8) * 8
    while t >= 8:
        if total_rows % t == 0:
            return t
        t -= 8
    return max(8, (rows_target // 8) * 8)


def positional_encoder_forward(
    x: jnp.ndarray,
    pe_full: jnp.ndarray,
    *,
    target_block_bytes: int = 4 << 20,
    donate_x: bool = False,
) -> jnp.ndarray:
    """
    x       : (B, S, D)
    pe_full : (max_seq_len, d_model) sinusoidal table
    returns : (B, S, D) = x + pe_full[:B][:, None, :]   (broadcast over seq, per PyTorch code)
    """
    B, S, D = x.shape
    assert pe_full.shape[0] >= B, "max_seq_len must be >= batch size (PyTorch quirk)"
    assert pe_full.shape[1] == D

    # pe[:x.size(0), :]  -> one positional row per *batch* element (kept on purpose).
    pe_slice = pe_full[:B].astype(jnp.float32)  # (B, D)

    # --- lane folding: smallest k with (k*D) % 128 == 0 and k | S ---
    k = 128 // math.gcd(D, 128)
    if k > 1 and (S % k != 0):
        k = 1                      # fallback: full-dim (possibly masked) lane width
    R = S // k                     # folded "row" count per batch
    L = k * D                      # lane width per folded row

    x_r = x.reshape(B, R, L)                               # layout-preserving
    pe_r = jnp.tile(pe_slice, (1, k)).reshape(B, 1, L)     # (B, 1, L), tiny, f32

    itemsize = jnp.dtype(x.dtype).itemsize
    slab_bytes = R * L * itemsize          # bytes of one batch element (folded)
    total_bytes = B * slab_bytes

    # --- block selection: ~target_block_bytes per step ---
    if slab_bytes >= target_block_bytes:
        # Large per-batch slab: tile rows within one batch element.
        tb = 1
        rows_target = max(8, target_block_bytes // (L * itemsize))
        tr = _pick_row_tile(R, rows_target)
    else:
        # Small per-batch slab: fold several batch elements into one block.
        tr = R
        tb = _largest_divisor_leq(B, max(1, target_block_bytes // max(1, slab_bytes)))

    nb = pl.cdiv(B, tb)
    nr = pl.cdiv(R, tr)

    # Megacore (v7x): large inputs should give >= 2 grid steps so both TCs get work.
    if nb * nr == 1 and total_bytes > (512 << 10):
        if R >= 16:
            tr = _pick_row_tile(R, max(8, R // 2))
            nr = pl.cdiv(R, tr)
        elif B >= 2:
            tb = _largest_divisor_leq(B, max(1, B // 2))
            nb = pl.cdiv(B, tb)

    # --- VMEM budget from the actual (double-buffered) blocks, with headroom ---
    padded_tr = -(-tr // 8) * 8
    x_block_bytes = tb * padded_tr * L * itemsize          # one input/output buffer
    pe_block_bytes = tb * 8 * L * 4                        # sublane-padded pe tile
    needed = 2 * (2 * x_block_bytes) + 2 * pe_block_bytes + (1 << 20)
    vmem_limit = int(min(max(needed, 32 << 20), 48 << 20))

    cost = pl.CostEstimate(
        flops=B * R * L,
        transcendentals=0,
        bytes_accessed=2 * B * R * L * itemsize + B * L * 4,
    )

    out = pl.pallas_call(
        _pe_add_kernel,
        out_shape=jax.ShapeDtypeStruct((B, R, L), x.dtype),
        grid_spec=pltpu.PrefetchScalarGridSpec(
            num_scalar_prefetch=0,
            grid=(nb, nr),
            in_specs=[
                pl.BlockSpec((tb, tr, L), lambda bi, ri: (bi, ri, 0)),
                # Per-batch-tile pe rows; re-DMA'd only when the batch tile changes.
                pl.BlockSpec((tb, 1, L), lambda bi, ri: (bi, 0, 0)),
            ],
            out_specs=pl.BlockSpec((tb, tr, L), lambda bi, ri: (bi, ri, 0)),
        ),
        compiler_params=pltpu.CompilerParams(
            dimension_semantics=("parallel", "parallel"),
            vmem_limit_bytes=vmem_limit,
        ),
        cost_estimate=cost,
        # Optional in-place update when the caller genuinely donates x under jit.
        input_output_aliases={0: 0} if donate_x else {},
    )(x_r, pe_r)

    return out.reshape(B, S, D)


if __name__ == "__main__":
    key = jax.random.PRNGKey(0)
    MAX_SEQ_LEN = 512

    # Small shapes consistent with forward(): x = [batch, series_length, fea_dim].
    # Cover: lane-folded (D=32 -> k=4), D=64 -> k=2, already lane-dense (D=128),
    # generalized folding (D=96 -> k=4, L=384), fallback path (D=48, S=7 -> k=1),
    # and a batch-folded block spanning all 4 batch elements.
    configs = [(2, 8, 32), (2, 16, 64), (2, 8, 128), (2, 8, 96), (2, 7, 48), (4, 64, 128)]

    for B, S, D in configs:
        kx, key = jax.random.split(key)
        x = jax.random.normal(kx, (B, S, D), dtype=jnp.float32)
        pe_table = _build_pe_table(MAX_SEQ_LEN, D)

        out = positional_encoder_forward(x, pe_table)
        out = jax.block_until_ready(out)

        # Reference in plain JAX (mirrors the PyTorch broadcast exactly).
        ref = x + pe_table[:B].reshape(B, 1, D)
        assert out.shape == (B, S, D)
        assert jnp.allclose(out, ref, atol=1e-6), f"mismatch vs reference for {(B, S, D)}"

    print("KERNEL_OK")
</pallas_src>

<mosaic_0001>
module attributes {stable_mosaic.version = 11 : i64} {
  func.func @_pe_add_kernel(%arg0: i32, %arg1: i32, %arg2: memref<2x2x128xf32, #tpu.memory_space<vmem>>, %arg3: memref<2x1x128xf32, #tpu.memory_space<vmem>>, %arg4: memref<2x2x128xf32, #tpu.memory_space<vmem>>) attributes {dimension_semantics = [#tpu.dimension_semantics<parallel>, #tpu.dimension_semantics<parallel>], iteration_bounds = array<i64: 1, 1>, scalar_prefetch = 0 : i64, scratch_operands = 0 : i64, tpu.core_type = #tpu.core_type<tc>, window_params = [{transform_indices = @transform_0, window_bounds = array<i64: 2, 2, 128>}, {transform_indices = @transform_1, window_bounds = array<i64: 2, 1, 128>}, {transform_indices = @transform_2, window_bounds = array<i64: 2, 2, 128>}]} {
    %c0 = arith.constant 0 : index
    %c0_0 = arith.constant 0 : index
    %c0_1 = arith.constant 0 : index
    %0 = vector.load %arg2[%c0, %c0_0, %c0_1] : memref<2x2x128xf32, #tpu.memory_space<vmem>>, vector<2x2x128xf32>
    %c0_2 = arith.constant 0 : index
    %c0_3 = arith.constant 0 : index
    %c0_4 = arith.constant 0 : index
    %1 = vector.load %arg3[%c0_2, %c0_3, %c0_4] : memref<2x1x128xf32, #tpu.memory_space<vmem>>, vector<2x1x128xf32>
    %2 = vector.broadcast %1 : vector<2x1x128xf32> to vector<2x2x128xf32>
    %3 = arith.addf %0, %2 : vector<2x2x128xf32>
    %c0_5 = arith.constant 0 : index
    %c0_6 = arith.constant 0 : index
    %c0_7 = arith.constant 0 : index
    %4 = vector.load %arg4[%c0_5, %c0_6, %c0_7] : memref<2x2x128xf32, #tpu.memory_space<vmem>>, vector<2x2x128xf32>
    tpu.vector_store %arg4[%c0_5, %c0_6, %c0_7], %3 {strides = array<i32>} : memref<2x2x128xf32, #tpu.memory_space<vmem>>, vector<2x2x128xf32>,
    return
  }
  func.func @transform_0(%arg0: i32, %arg1: i32) -> (i32, i32, i32) {
    %c0_i32 = arith.constant 0 : i32
    %c0_i32_0 = arith.constant 0 : i32
    return %arg0, %arg1, %c0_i32 : i32, i32, i32
  }
  func.func @transform_1(%arg0: i32, %arg1: i32) -> (i32, i32, i32) {
    %c0_i32 = arith.constant 0 : i32
    %c0_i32_0 = arith.constant 0 : i32
    %c0_i32_1 = arith.constant 0 : i32
    return %arg0, %c0_i32, %c0_i32_0 : i32, i32, i32
  }
  func.func @transform_2(%arg0: i32, %arg1: i32) -> (i32, i32, i32) {
    %c0_i32 = arith.constant 0 : i32
    %c0_i32_0 = arith.constant 0 : i32
    return %arg0, %arg1, %c0_i32 : i32, i32, i32
  }
}

</mosaic_0001>

<bundles_post_ra>
// kernel: tpu_custom_call.1
= control target key start
LH: loop header
LB: loop body
LE: loop exit
PB: predicated region body
PF: predicated region fallthrough
CT: control target
= control target key end

     0   :  { %7 = vsyncpa [#allocation3], 0  ;;  %s172_s0 = inlined_call_operand.hbm [shape: f32[2,2,128], index: 0, kind: input, shape index: {}]   ;;  %s173_s1 = inlined_call_operand.vmem [shape: f32[2,1,128], index: 1, kind: input, shape index: {}]   ;;  %s174_s2 = inlined_call_operand.hbm [shape: f32[2,2,128], index: 2, kind: output, shape index: {}]  }
   0x1   :  { %8 = vsyncpa [#allocation4], 0  ;;  %s117_s9 = smov [#allocation2]   ;;  %s69_s13 = scalar_lea.hbm %s172_s0, 64 }
   0x2   :  { %s14_s10 = sshll.u32 %s117_s9, 4  ;;  %p70_p0 = scmp.ne.s32.totalorder %s172_s0, %s69_s13  ;;  %s15_s10 = int_to_ptr.vmem [resolvable:$true] %s14_s10 }
   0x3   :  { %p73_p1 = scmp.lt.u32.totalorder %s69_s13, %s172_s0 }
   0x5   :  { %p75_p2 = pnand %p73_p1, %p70_p0 }
   0x7   :  { %78 = shalt.err (!%p75_p2)
}
   0x8   :  { %s79_s18 = scalar_lea.vmem %s15_s10, 64  ;;  %p84_p4 = scmp.lt.s32.totalorder %s15_s10, %s15_s10 }
   0x9   :  { %p80_p3 = scmp.ne.s32.totalorder %s15_s10, %s79_s18  ;;  %p85_p5 = scmp.lt.s32.totalorder %s79_s18, %s79_s18 }
   0xb   :  { %p86_p6 = por %p85_p5, %p84_p4 }
   0xd   :  { %p87_p7 = pnand %p86_p6, %p80_p3 }
   0xf   :  { %90 = shalt.err (!%p87_p7)
}
  0x10   :  { %s118_s19 = smov 32   ;;  %s119_s20 = smov 2  }
  0x11   :  { %20 = dma.hbm_to_vmem [thread:$0]  %s172_s0, 64, %s15_s10, [#allocation3], %s118_s19, %s118_s19, %s119_s20  }
  0x12   :  { %113 = dma.done.wait [#allocation3], 64  }
  0x13   :  { %114 = vsyncadd [#allocation3], 4294967232  ;;  %s120_s23 = smov [#allocation5]   ;;  %v26_v0 = vld [vmem:[#allocation2] sm:$0x3] }
  0x14   :  { %s51_s24 = sshll.u32 %s120_s23, 4  ;;  %v63_v1 = vld [vmem:[%s173_s1] ss:$0 sm:$0xff]  ;;  %v27_v2 = vld [vmem:[#allocation2 + $0x2] sm:$0x3]  ;;  %s52_s24 = int_to_ptr.vmem [resolvable:$true] %s51_s24 }
  0x15   :  { %v42_v3 = vadd.f32 %v63_v1, %v26_v0  ;;  %v64_v4 = vld [vmem:[%s173_s1 + $0x1] ss:$0 sm:$0xff]  ;;  %s91_s0 = scalar_lea.vmem %s52_s24, 64  ;;  %p96_p9 = scmp.lt.s32.totalorder %s52_s24, %s52_s24 }
  0x16   :  { %v43_v5 = vadd.f32 %v64_v4, %v27_v2  ;;  %p92_p8 = scmp.ne.s32.totalorder %s52_s24, %s91_s0  ;;  %p97_p10 = scmp.lt.s32.totalorder %s91_s0, %s91_s0 }
  0x17   :  { %44 = vst [vmem:[#allocation5] sm:$0x3] %v42_v3 }
  0x18   :  { %45 = vst [vmem:[#allocation5 + $0x2] sm:$0x3] %v43_v5  ;;  %p98_p11 = por %p97_p10, %p96_p9 }
  0x1a   :  { %p99_p12 = pnand %p98_p11, %p92_p8 }
  0x1c   :  { %102 = shalt.err (!%p99_p12)
}
  0x1d   :  { %s103_s3 = scalar_lea.hbm %s174_s2, 64 }
  0x1e   :  { %p104_p13 = scmp.ne.s32.totalorder %s174_s2, %s103_s3  ;;  %p107_p0 = scmp.lt.u32.totalorder %s103_s3, %s174_s2 }
  0x20   :  { %p109_p1 = pnand %p107_p0, %p104_p13 }
  0x22   :  { %112 = shalt.err (!%p109_p1)
}
  0x23   :  { %57 = dma.vmem_to_hbm [thread:$0]  %s52_s24, 64, %s174_s2, [#allocation4], %s118_s19, %s118_s19, %s119_s20  }
  0x24   :  { %115 = dma.done.wait [#allocation4], 64  }
  0x25   :  { %116 = vsyncadd [#allocation4], 4294967232 }
  0x26   :  { %61 = vsyncpa [#allocation3], 1 }
  0x27   :  { %62 = vsyncpa [#allocation4], 1 }

</bundles_post_ra>
